<compile_context>
chip_gen: v7x
topology: tpu7x:2x2x1
jax: 0.10.0
libtpu: 0.0.40
codegen_flags: <defaults>
</compile_context>

<pallas_src>
import functools

import jax
import jax.numpy as jnp
import numpy as np
from jax import lax
from jax.experimental import pallas as pl
from jax.experimental.pallas import tpu as pltpu

_LANE = 128
_SUBLANE = 8


def _round_up(n, m):
    return ((n + m - 1) // m) * m


def _rec_gcn_kernel(a_ref, a0_ref, x_ref, w_ref, b_ref, wfc_ref, out_ref, *, depth):
    """One graph-group (block-diagonal batch of graphs) per grid step.

    a_ref:   (1, M, M)    bf16 block-diagonal normalized adjacency
    a0_ref:  (1, GP, M)   bf16 "node-0" rows of that adjacency (one per graph)
    x_ref:   (1, M, FP)   bf16 stacked node features
    w_ref:   (FP, FP)     bf16 GCN weight, stored (in, out) so `x @ w`
    b_ref:   (1, FP)      f32  GCN bias
    wfc_ref: (1, FP)      f32  fc weight
    out_ref: (1, GP, 128) f32  fc(x_g[0]) per graph (without fc bias), lane-broadcast
    """
    a = a_ref[0]                                   # (M, M)   bf16
    w = w_ref[...]                                 # (FP, FP) bf16
    xb = x_ref[0]                                  # (M, FP)  bf16
    M, FP = xb.shape
    # Hoist the bias broadcast out of the depth loop (JAX does not CSE it).
    bb = jnp.broadcast_to(b_ref[...], (M, FP))     # f32

    def layer(xv):
        h = jnp.dot(xv, w, preferred_element_type=jnp.float32)            # X W        (MXU)
        h = jnp.dot(a, h.astype(jnp.bfloat16),
                    preferred_element_type=jnp.float32) + bb              # A X W + b  (MXU)
        return jnp.maximum(h, 0.0).astype(jnp.bfloat16)                   # ReLU (VPU)

    # depth-1 full GCN layers (dropout is identity in eval mode).
    n_full = depth - 1
    if n_full <= 8:
        for _ in range(n_full):
            xb = layer(xb)
    else:
        xb = lax.fori_loop(0, n_full, lambda i, v: layer(v), xb)

    # Final layer, reordered: only node-0 rows are needed ->
    # relu((A0 @ X) @ W + b) instead of the full X @ W followed by a row read.
    agg = jnp.dot(a0_ref[0], xb, preferred_element_type=jnp.float32)       # (GP, FP)
    rows = jnp.dot(agg.astype(jnp.bfloat16), w,
                   preferred_element_type=jnp.float32) + b_ref[...]
    rows = jnp.maximum(rows, 0.0)                                          # (GP, FP) f32

    # fc(x[0]) as VPU multiply + cross-lane reduce (no degenerate MXU matmul).
    vals = jnp.sum(rows * wfc_ref[...], axis=-1, keepdims=True)            # (GP, 1)
    out_ref[0] = jnp.broadcast_to(vals, out_ref.shape[1:])


@functools.partial(jax.jit, static_argnames=("depth", "graphs_per_group"))
def simple_rec_gnn_forward_batched(a_norm, x, w, b, w_fc, b_fc, *, depth,
                                   graphs_per_group=None):
    """Batched forward over G graphs.

    a_norm: (G, N, N)  dense normalized adjacency per graph
    x:      (G, N, F)  node features per graph
    w:      (F, F)     GCN weight (in, out);  b: (F,)  GCN bias
    w_fc:   (F,)       fc weight;             b_fc: () fc bias
    Returns (G,): fc(x_g[0]) for every graph.
    """
    G, N, F = x.shape
    depth = int(depth)
    f32, bf16 = jnp.float32, jnp.bfloat16

    if depth == 0:
        return jnp.dot(x[:, 0, :].astype(f32), w_fc.astype(f32)) + jnp.asarray(b_fc, f32)

    # Graph-group decomposition: >=2 grid steps when possible (both v7x TCs),
    # with each group packed block-diagonally so the MXU sees one big matmul.
    if graphs_per_group is None:
        graphs_per_group = max(1, (G + 1) // 2)
    gpg = min(int(graphs_per_group), G)
    n_groups = (G + gpg - 1) // gpg
    g_tot = n_groups * gpg

    FP = _round_up(F, _LANE)
    M = _round_up(gpg * N, 16)        # sublane alignment for bf16 operands
    GP = _round_up(gpg, 16)

    # ---- build block-diagonal operands (plain XLA, once per call) ----
    a_g = jnp.pad(a_norm.astype(f32), ((0, g_tot - G), (0, 0), (0, 0)))
    a_g = a_g.reshape(n_groups, gpg, N, N)
    eye = jnp.eye(gpg, dtype=f32)
    a_bd = a_g[:, :, :, None, :] * eye[None, :, None, :, None]            # (ng,gpg,N,gpg,N)
    a_bd = a_bd.reshape(n_groups, gpg * N, gpg * N)
    a_bd = jnp.pad(a_bd, ((0, 0), (0, M - gpg * N), (0, M - gpg * N))).astype(bf16)

    a0 = a_g[:, :, 0, :][:, :, None, :] * eye[None, :, :, None]           # (ng,gpg,gpg,N)
    a0 = a0.reshape(n_groups, gpg, gpg * N)
    a0 = jnp.pad(a0, ((0, 0), (0, GP - gpg), (0, M - gpg * N))).astype(bf16)

    x_g = jnp.pad(x.astype(f32), ((0, g_tot - G), (0, 0), (0, FP - F)))
    x_g = x_g.reshape(n_groups, gpg * N, FP)
    x_g = jnp.pad(x_g, ((0, 0), (0, M - gpg * N), (0, 0))).astype(bf16)

    w_p = jnp.pad(w.astype(f32), ((0, FP - F), (0, FP - F))).astype(bf16)
    b_p = jnp.pad(b.astype(f32).reshape(1, F), ((0, 0), (0, FP - F)))
    wfc_p = jnp.pad(w_fc.astype(f32).reshape(1, F), ((0, 0), (0, FP - F)))

    kernel = functools.partial(_rec_gcn_kernel, depth=depth)
    out = pl.pallas_call(
        kernel,
        out_shape=jax.ShapeDtypeStruct((n_groups, GP, _LANE), jnp.float32),
        grid=(n_groups,),
        in_specs=[
            pl.BlockSpec((1, M, M), lambda g: (g, 0, 0)),      # block-diag A per group
            pl.BlockSpec((1, GP, M), lambda g: (g, 0, 0)),     # node-0 rows of A
            pl.BlockSpec((1, M, FP), lambda g: (g, 0, 0)),     # stacked X per group
            pl.BlockSpec((FP, FP), lambda g: (0, 0)),          # W: same block -> resident
            pl.BlockSpec((1, FP), lambda g: (0, 0)),           # b
            pl.BlockSpec((1, FP), lambda g: (0, 0)),           # fc weight
        ],
        out_specs=pl.BlockSpec((1, GP, _LANE), lambda g: (g, 0, 0)),
        compiler_params=pltpu.CompilerParams(
            dimension_semantics=("parallel",)),                # both TCs on v7x
    )(a_bd, a0, x_g, w_p, b_p, wfc_p)

    vals = out[:, :gpg, 0].reshape(g_tot)[:G]
    return vals + jnp.asarray(b_fc, f32)


def simple_rec_gnn_forward(a_norm, x, w, b, w_fc, b_fc, depth):
    """Single-graph forward; returns shape (1,) like torch `fc(x[0])`."""
    out = simple_rec_gnn_forward_batched(
        a_norm[None], x[None], w, b, w_fc, b_fc, depth=depth, graphs_per_group=1)
    return out.reshape(1)


def build_norm_adj(edge_index, num_nodes):
    """Dense D^{-1/2} (A + I) D^{-1/2}, matching PyG gcn_norm (edge_weight=None):
    duplicate edges are summed, existing self-loops replaced by weight-1 loops."""
    # TODO(synk): if inputs can carry weighted/explicit self-loops, mirror PyG's
    # add_remaining_self_loops accumulation exactly.
    src = edge_index[0]
    dst = edge_index[1]
    ew = jnp.where(src == dst, 0.0, 1.0).astype(jnp.float32)   # drop given self-loops
    a = jnp.zeros((num_nodes, num_nodes), jnp.float32)
    a = a.at[dst, src].add(ew)                                 # A[dst, src] += w_e (sums dups)
    a = a + jnp.eye(num_nodes, dtype=jnp.float32)              # add_remaining_self_loops
    deg = a.sum(axis=1)
    dinv = jnp.where(deg > 0, lax.rsqrt(deg), 0.0)
    return dinv[:, None] * a * dinv[None, :]


def _reference_forward(a, x, w, b, w_fc, b_fc, depth):
    """Pure-JAX reference of the PyTorch forward (eval mode), f32 throughout."""
    for _ in range(depth):
        x = jnp.maximum(
            jnp.dot(a, jnp.dot(x, w, precision="highest"), precision="highest")
            + b[None, :],
            0.0,
        )
    return jnp.dot(x[0], w_fc, precision="highest") + b_fc


if __name__ == "__main__":
    N = 16       # number of nodes
    F = 16       # num_node_features (GCNConv: F -> F, fc: F -> 1)
    DEPTH = 3
    G = 8        # graphs batched into one pallas_call

    key = jax.random.PRNGKey(0)
    k_x, k_w, k_b, k_wfc, k_bfc = jax.random.split(key, 5)

    # Deterministic edge_index: bidirectional ring plus chords (duplicates included
    # on purpose -- they are summed like PyG's scatter_add).
    src_fwd = jnp.arange(N, dtype=jnp.int32)
    dst_fwd = (src_fwd + 1) % N
    chord_src = jnp.array([0, 4, 8, 12], dtype=jnp.int32)
    chord_dst = jnp.array([8, 12, 0, 4], dtype=jnp.int32)
    src = jnp.concatenate([src_fwd, dst_fwd, chord_src, chord_dst])
    dst = jnp.concatenate([dst_fwd, src_fwd, chord_dst, chord_src])
    edge_index = jnp.stack([src, dst], axis=0)                  # (2, E)

    a_norm = build_norm_adj(edge_index, N)
    a_batch = jnp.broadcast_to(a_norm, (G, N, N))

    # Parameters (shapes from __init__):
    #   conv = GCNConv(F, F): weight (F, F) stored (in, out), bias (F,)
    #   fc   = Linear(F, 1):  weight (F,)   stored (in,),     bias ()
    x = jax.random.normal(k_x, (G, N, F), dtype=jnp.float32)
    w = jax.random.normal(k_w, (F, F), dtype=jnp.float32) * 0.2
    b = jax.random.normal(k_b, (F,), dtype=jnp.float32) * 0.1
    w_fc = jax.random.normal(k_wfc, (F,), dtype=jnp.float32) * 0.2
    b_fc = jax.random.normal(k_bfc, (), dtype=jnp.float32) * 0.1

    # Batched kernel call (all G graphs, block-diagonal packing, 2 grid steps).
    out = jax.block_until_ready(
        simple_rec_gnn_forward_batched(a_batch, x, w, b, w_fc, b_fc, depth=DEPTH))
    assert out.shape == (G,)

    # Single-graph API parity with the torch module: returns (1,).
    out0 = jax.block_until_ready(
        simple_rec_gnn_forward(a_norm, x[0], w, b, w_fc, b_fc, DEPTH))
    assert out0.shape == (1,)

    # Correctness against a pure-JAX f32 reference (kernel matmuls are bf16/f32-acc).
    ref = jax.vmap(
        lambda a_i, x_i: _reference_forward(a_i, x_i, w, b, w_fc, b_fc, DEPTH)
    )(a_batch, x)
    np.testing.assert_allclose(np.asarray(out), np.asarray(ref), rtol=2e-2, atol=2e-2)
    np.testing.assert_allclose(np.asarray(out0)[0], np.asarray(ref)[0], rtol=2e-2, atol=2e-2)

    print("KERNEL_OK")
</pallas_src>

<mosaic_0001>
module attributes {stable_mosaic.version = 11 : i64} {
  func.func @_rec_gcn_kernel(%arg0: i32, %arg1: memref<1x64x64xbf16, #tpu.memory_space<vmem>>, %arg2: memref<1x16x64xbf16, #tpu.memory_space<vmem>>, %arg3: memref<1x64x128xbf16, #tpu.memory_space<vmem>>, %arg4: memref<128x128xbf16, #tpu.memory_space<vmem>>, %arg5: memref<1x128xf32, #tpu.memory_space<vmem>>, %arg6: memref<1x128xf32, #tpu.memory_space<vmem>>, %arg7: memref<1x16x128xf32, #tpu.memory_space<vmem>>) attributes {dimension_semantics = [#tpu.dimension_semantics<parallel>], iteration_bounds = array<i64: 2>, scalar_prefetch = 0 : i64, scratch_operands = 0 : i64, tpu.core_type = #tpu.core_type<tc>, window_params = [{transform_indices = @transform_0, window_bounds = array<i64: 1, 64, 64>}, {transform_indices = @transform_1, window_bounds = array<i64: 1, 16, 64>}, {transform_indices = @transform_2, window_bounds = array<i64: 1, 64, 128>}, {pipeline_mode = #tpu.pipeline_mode<synchronous>, transform_indices = @transform_3, window_bounds = array<i64: 128, 128>}, {pipeline_mode = #tpu.pipeline_mode<synchronous>, transform_indices = @transform_4, window_bounds = array<i64: 1, 128>}, {pipeline_mode = #tpu.pipeline_mode<synchronous>, transform_indices = @transform_5, window_bounds = array<i64: 1, 128>}, {transform_indices = @transform_6, window_bounds = array<i64: 1, 16, 128>}]} {
    %c0 = arith.constant 0 : index
    %c0_0 = arith.constant 0 : index
    %c0_1 = arith.constant 0 : index
    %0 = vector.load %arg1[%c0, %c0_0, %c0_1] : memref<1x64x64xbf16, #tpu.memory_space<vmem>>, vector<1x64x64xbf16>
    %1 = vector.shape_cast %0 : vector<1x64x64xbf16> to vector<64x64xbf16>
    %c0_2 = arith.constant 0 : index
    %c0_3 = arith.constant 0 : index
    %2 = vector.load %arg4[%c0_2, %c0_3] : memref<128x128xbf16, #tpu.memory_space<vmem>>, vector<128x128xbf16>
    %c0_4 = arith.constant 0 : index
    %c0_5 = arith.constant 0 : index
    %c0_6 = arith.constant 0 : index
    %3 = vector.load %arg3[%c0_4, %c0_5, %c0_6] : memref<1x64x128xbf16, #tpu.memory_space<vmem>>, vector<1x64x128xbf16>
    %4 = vector.shape_cast %3 : vector<1x64x128xbf16> to vector<64x128xbf16>
    %c0_7 = arith.constant 0 : index
    %c0_8 = arith.constant 0 : index
    %5 = vector.load %arg5[%c0_7, %c0_8] : memref<1x128xf32, #tpu.memory_space<vmem>>, vector<1x128xf32>
    %6 = vector.shape_cast %5 : vector<1x128xf32> to vector<1x128xf32>
    %7 = vector.broadcast %6 : vector<1x128xf32> to vector<64x128xf32>
    %cst = arith.constant dense<0.000000e+00> : vector<64x128xf32>
    %8 = tpu.matmul %4, %2, %cst {dimension_numbers = #tpu.dot_dimension_numbers<[1], [0], [0], [1], [0, 0, 1, 1], [], []>} : vector<64x128xbf16>, vector<128x128xbf16>, vector<64x128xf32> -> vector<64x128xf32>
    %9 = arith.truncf %8 : vector<64x128xf32> to vector<64x128xbf16>
    %cst_9 = arith.constant dense<0.000000e+00> : vector<64x128xf32>
    %10 = tpu.matmul %1, %9, %cst_9 {dimension_numbers = #tpu.dot_dimension_numbers<[1], [0], [0], [1], [0, 0, 1, 1], [], []>} : vector<64x64xbf16>, vector<64x128xbf16>, vector<64x128xf32> -> vector<64x128xf32>
    %11 = arith.addf %10, %7 : vector<64x128xf32>
    %cst_10 = arith.constant 0.000000e+00 : f32
    %12 = vector.broadcast %cst_10 : f32 to vector<64x128xf32>
    %13 = arith.maximumf %11, %12 : vector<64x128xf32>
    %14 = arith.truncf %13 : vector<64x128xf32> to vector<64x128xbf16>
    %cst_11 = arith.constant dense<0.000000e+00> : vector<64x128xf32>
    %15 = tpu.matmul %14, %2, %cst_11 {dimension_numbers = #tpu.dot_dimension_numbers<[1], [0], [0], [1], [0, 0, 1, 1], [], []>} : vector<64x128xbf16>, vector<128x128xbf16>, vector<64x128xf32> -> vector<64x128xf32>
    %16 = arith.truncf %15 : vector<64x128xf32> to vector<64x128xbf16>
    %cst_12 = arith.constant dense<0.000000e+00> : vector<64x128xf32>
    %17 = tpu.matmul %1, %16, %cst_12 {dimension_numbers = #tpu.dot_dimension_numbers<[1], [0], [0], [1], [0, 0, 1, 1], [], []>} : vector<64x64xbf16>, vector<64x128xbf16>, vector<64x128xf32> -> vector<64x128xf32>
    %18 = arith.addf %17, %7 : vector<64x128xf32>
    %cst_13 = arith.constant 0.000000e+00 : f32
    %19 = vector.broadcast %cst_13 : f32 to vector<64x128xf32>
    %20 = arith.maximumf %18, %19 : vector<64x128xf32>
    %21 = arith.truncf %20 : vector<64x128xf32> to vector<64x128xbf16>
    %c0_14 = arith.constant 0 : index
    %c0_15 = arith.constant 0 : index
    %c0_16 = arith.constant 0 : index
    %22 = vector.load %arg2[%c0_14, %c0_15, %c0_16] : memref<1x16x64xbf16, #tpu.memory_space<vmem>>, vector<1x16x64xbf16>
    %23 = vector.shape_cast %22 : vector<1x16x64xbf16> to vector<16x64xbf16>
    %cst_17 = arith.constant dense<0.000000e+00> : vector<16x128xf32>
    %24 = tpu.matmul %23, %21, %cst_17 {dimension_numbers = #tpu.dot_dimension_numbers<[1], [0], [0], [1], [0, 0, 1, 1], [], []>} : vector<16x64xbf16>, vector<64x128xbf16>, vector<16x128xf32> -> vector<16x128xf32>
    %25 = arith.truncf %24 : vector<16x128xf32> to vector<16x128xbf16>
    %cst_18 = arith.constant dense<0.000000e+00> : vector<16x128xf32>
    %26 = tpu.matmul %25, %2, %cst_18 {dimension_numbers = #tpu.dot_dimension_numbers<[1], [0], [0], [1], [0, 0, 1, 1], [], []>} : vector<16x128xbf16>, vector<128x128xbf16>, vector<16x128xf32> -> vector<16x128xf32>
    %c0_19 = arith.constant 0 : index
    %c0_20 = arith.constant 0 : index
    %27 = vector.load %arg5[%c0_19, %c0_20] : memref<1x128xf32, #tpu.memory_space<vmem>>, vector<1x128xf32>
    %28 = vector.broadcast %27 : vector<1x128xf32> to vector<16x128xf32>
    %29 = arith.addf %26, %28 : vector<16x128xf32>
    %cst_21 = arith.constant 0.000000e+00 : f32
    %30 = vector.broadcast %cst_21 : f32 to vector<16x128xf32>
    %31 = arith.maximumf %29, %30 : vector<16x128xf32>
    %c0_22 = arith.constant 0 : index
    %c0_23 = arith.constant 0 : index
    %32 = vector.load %arg6[%c0_22, %c0_23] : memref<1x128xf32, #tpu.memory_space<vmem>>, vector<1x128xf32>
    %33 = vector.broadcast %32 : vector<1x128xf32> to vector<16x128xf32>
    %34 = arith.mulf %31, %33 : vector<16x128xf32>
    %cst_24 = arith.constant dense<0.000000e+00> : vector<16xf32>
    %35 = vector.multi_reduction <add>, %34, %cst_24 [1] : vector<16x128xf32> to vector<16xf32>
    %36 = vector.shape_cast %35 : vector<16xf32> to vector<16x1xf32>
    %37 = vector.shape_cast %36 : vector<16x1xf32> to vector<16x1xf32>
    %38 = vector.broadcast %37 : vector<16x1xf32> to vector<16x128xf32>
    %c0_25 = arith.constant 0 : index
    %c0_26 = arith.constant 0 : index
    %c0_27 = arith.constant 0 : index
    %39 = vector.load %arg7[%c0_25, %c0_26, %c0_27] : memref<1x16x128xf32, #tpu.memory_space<vmem>>, vector<1x16x128xf32>
    %40 = vector.shape_cast %39 : vector<1x16x128xf32> to vector<16x128xf32>
    %41 = vector.shape_cast %38 : vector<16x128xf32> to vector<1x16x128xf32>
    tpu.vector_store %arg7[%c0_25, %c0_26, %c0_27], %41 {strides = array<i32>} : memref<1x16x128xf32, #tpu.memory_space<vmem>>, vector<1x16x128xf32>,
    return
  }
  func.func @transform_0(%arg0: i32) -> (i32, i32, i32) {
    %c0_i32 = arith.constant 0 : i32
    %c0_i32_0 = arith.constant 0 : i32
    %c0_i32_1 = arith.constant 0 : i32
    return %arg0, %c0_i32, %c0_i32_0 : i32, i32, i32
  }
  func.func @transform_1(%arg0: i32) -> (i32, i32, i32) {
    %c0_i32 = arith.constant 0 : i32
    %c0_i32_0 = arith.constant 0 : i32
    %c0_i32_1 = arith.constant 0 : i32
    return %arg0, %c0_i32, %c0_i32_0 : i32, i32, i32
  }
  func.func @transform_2(%arg0: i32) -> (i32, i32, i32) {
    %c0_i32 = arith.constant 0 : i32
    %c0_i32_0 = arith.constant 0 : i32
    %c0_i32_1 = arith.constant 0 : i32
    return %arg0, %c0_i32, %c0_i32_0 : i32, i32, i32
  }
  func.func @transform_3(%arg0: i32) -> (i32, i32) {
    %c0_i32 = arith.constant 0 : i32
    %c0_i32_0 = arith.constant 0 : i32
    %c0_i32_1 = arith.constant 0 : i32
    return %c0_i32, %c0_i32_0 : i32, i32
  }
  func.func @transform_4(%arg0: i32) -> (i32, i32) {
    %c0_i32 = arith.constant 0 : i32
    %c0_i32_0 = arith.constant 0 : i32
    %c0_i32_1 = arith.constant 0 : i32
    return %c0_i32, %c0_i32_0 : i32, i32
  }
  func.func @transform_5(%arg0: i32) -> (i32, i32) {
    %c0_i32 = arith.constant 0 : i32
    %c0_i32_0 = arith.constant 0 : i32
    %c0_i32_1 = arith.constant 0 : i32
    return %c0_i32, %c0_i32_0 : i32, i32
  }
  func.func @transform_6(%arg0: i32) -> (i32, i32, i32) {
    %c0_i32 = arith.constant 0 : i32
    %c0_i32_0 = arith.constant 0 : i32
    %c0_i32_1 = arith.constant 0 : i32
    return %arg0, %c0_i32, %c0_i32_0 : i32, i32, i32
  }
}

</mosaic_0001>

<bundles_post_ra>
// kernel: simple_rec_gnn_forward_batched.1
= control target key start
LH: loop header
LB: loop body
LE: loop exit
PB: predicated region body
PF: predicated region fallthrough
CT: control target
= control target key end

     0   :  { %s1203_s21 = smov 0   ;;  %s1367_s0 = inlined_call_operand.vmem [shape: bf16[2,64,64], index: 0, kind: input, shape index: {}]   ;;  %s1368_s1 = inlined_call_operand.vmem [shape: bf16[2,16,64], index: 1, kind: input, shape index: {}]   ;;  %s1369_s2 = inlined_call_operand.vmem [shape: bf16[2,64,128], index: 2, kind: input, shape index: {}]   ;;  %s1370_s3 = inlined_call_operand.vmem [shape: bf16[128,128], index: 3, kind: input, shape index: {}]   ;;  %s1371_s4 = inlined_call_operand.vmem [shape: f32[1,128], index: 4, kind: input, shape index: {}]   ;;  %s1372_s5 = inlined_call_operand.vmem [shape: f32[1,128], index: 5, kind: input, shape index: {}]   ;;  %s1373_s6 = inlined_call_operand.vmem [shape: f32[2,16,128], index: 6, kind: output, shape index: {}]  }
   0x1 LB: > { %s918_s22 = sadd.s32 4294967295, %s1164_s21   ;;  %p922_p0 = scmp.ge.s32.totalorder %s1164_s21, 1  ;;  %s1164_s21 = sphi %s1203_s21, %s16_s21  }
   0x2   : > { %p232_p1 = scmp.lt.s32.totalorder %s1164_s21, 3 }
   0x4   : > { %p233_p2 = pnand %p922_p0, %p232_p1 }
   0x5   : > { %v1214_v0 = vld [vmem:[%s1370_s3] sm:$0xff] (!%p233_p2)   ;;  %p272_p3 = scmp.lt.s32.totalorder (!%p233_p2), %s918_s22, 1  ;;  %v1219_v1 = vld [vmem:[%s1370_s3 + $0x8] sm:$0xff] (!%p233_p2)   ;;  %v1229_v2 = vld [vmem:[%s1370_s3 + $0x10] sm:$0xff] (!%p233_p2)   ;;  %vm493_vm0 = vcmask (!%p233_p2), 523264   ;;  %vm1167_vm1 = vmmov (!%p233_p2), 0  }
   0x6   : > { %236 = sbr.rel (%p233_p2) target bundleno = 1543 (0x607), region = 44  ;;  %1019 = vmatprep.subr.bf16.mxu0 (!%p233_p2), %v1214_v0  ;;  %v1239_v3 = vld [vmem:[%s1370_s3 + $0x18] sm:$0xff] (!%p233_p2)   ;;  %v1247_v5 = vld [vmem:[%s1370_s3 + $0x20] sm:$0xff] (!%p233_p2)   ;;  %v1254_v6 = vld [vmem:[%s1370_s3 + $0x28] sm:$0xff] (!%p233_p2)  }
   0x7   : > { %1020 = vmatpush3.bf16.msra.mxu0 (!%p233_p2), %v1214_v0  ;;  %v1261_v7 = vld [vmem:[%s1370_s3 + $0x30] sm:$0xff] (!%p233_p2)   ;;  %v1268_v8 = vld [vmem:[%s1370_s3 + $0x38] sm:$0xff] (!%p233_p2)   ;;  %v1315_v28 = vld [vmem:[%s1371_s4] ss:$0 sm:$0xff] (!%p233_p2) }
   0x8   : > { %1021 = vmatprep.subr.bf16.mxu0 (!%p233_p2), %v1219_v1 }
   0xb   : > { %1022 = vmatpush3.bf16.msra.mxu0 (!%p233_p2), %v1219_v1 }
   0xc   : > { %1023 = vmatprep.subr.bf16.mxu0 (!%p233_p2), %v1229_v2 }
   0xd   : > { %s1375_s22 = smov (!%p272_p3, %s918_s22), 1 }
   0xe   : > { %s961_s29 = sshll.u32 %s1375_s22, 5  ;;  %s962_s26 = sshll.u32 %s1375_s22, 3 }
   0xf   : > { %s286_s8 = scalar_lea.vmem %s1369_s2, %s961_s29  ;;  %1024 = vmatpush3.bf16.msra.mxu0 %v1229_v2  ;;  %s1276_s23 = scalar_lea.vmem %s1367_s0, %s961_s29 }
  0x10   : > { %v1149_v4 = vld [vmem:[%s286_s8] sm:$0xff]   ;;  %1025 = vmatprep.subr.bf16.mxu0 %v1239_v3  ;;  %v1150_v9 = vld [vmem:[%s286_s8 + $0x8] sm:$0xff]   ;;  %v1151_v10 = vld [vmem:[%s286_s8 + $0x10] sm:$0xff]   ;;  %s1338_s29 = scalar_lea.vmem %s1368_s1, %s962_s26 }
  0x11   : > { %1035 = vmatprep.mubr.bf16.mxu0 %v1149_v4  ;;  %v1152_v11 = vld [vmem:[%s286_s8 + $0x18] sm:$0xff]   ;;  %v1153_v12 = vld [vmem:[%s1276_s23] sm:$0xff]   ;;  %v1282_v25 = vld [vmem:[%s1276_s23 + $0x8] sm:$0xff]   ;;  %s964_s8 = sshll.u32 %s1375_s22, 4 }
  0x12   : > { %1051 = vmatprep.mubr.msk.bf16.mxu1 %vm493_vm0, %v1153_v12  ;;  %v1285_v26 = vld [vmem:[%s1276_s23 + $0x10] sm:$0xff]   ;;  %v1295_v27 = vld [vmem:[%s1276_s23 + $0x18] sm:$0xff]   ;;  %s291_s11 = scalar_lea.vmem %s1373_s6, %s964_s8 }
  0x13   : > { %1026 = vmatpush3.bf16.msra.mxu0 %v1239_v3 }
  0x14   : > { %1027 = vmatprep.subr.bf16.mxu0 %v1247_v5 }
  0x17   : > { %1028 = vmatpush3.bf16.msra.mxu0 %v1247_v5 }
  0x18   : > { %1029 = vmatprep.subr.bf16.mxu0 %v1254_v6 }
  0x1b   : > { %1030 = vmatpush3.bf16.msra.mxu0 %v1254_v6 }
  0x1c   : > { %1031 = vmatprep.subr.bf16.mxu0 %v1261_v7 }
  0x1f   : > { %1032 = vmatpush3.bf16.msra.mxu0 %v1261_v7 }
  0x20   : > { %1033 = vmatprep.subr.bf16.mxu0 %v1268_v8 }
  0x23   : > { %1034 = vmatpush3.bf16.msra.mxu0 %v1268_v8 }
  0x26   : > { %1036 = vmatmul.mubr.bf16.vlgmr.msra.gmra.mrb[0].mxu0 %v1150_v9 }
  0x27   : > { %1039 = vmatprep.mubr.bf16.mxu0 %v1151_v10 }
  0x2e   : > { %1040 = vmatmul.mubr.bf16.gmra.mrb[4].mxu0 %v1152_v11 }
  0x2f   : > { %1091 = vmatprep.mubr.msk.bf16.mxu0 %vm493_vm0, %v1153_v12 }
  0xf9   : > { %v1037_v13 = vpop.f32.mrb[0].mxu0 }
  0xfa   : > { %v438_v14 = vpop.f32.mrb[1].mxu0 }
  0xfb   : > { %v1038_v15 = vpop.f32.mrb[2].mxu0 }
  0xfc   : > { %v470_v16 = vpack.c.bf16 %v1038_v15, %v1037_v13  ;;  %v441_v17 = vpop.f32.mrb[3].mxu0  ;;  %v1166_v13 = vmov 0.0  }
  0xfd   : > { %v469_v18 = vpack.c.bf16 %v441_v17, %v438_v14 }
  0xff   : > { %1043 = vmatprep.subr.bf16.mxu1 %v469_v18 }
 0x100   : > { %1044 = vmatpush3.bf16.msra.mxu1 %v469_v18 }
 0x101   : > { %v1041_v19 = vpop.f32.mrb[4].mxu0  ;;  %1045 = vmatprep.subr.bf16.mxu1 %v470_v16 }
 0x102   : > { %v454_v20 = vpop.f32.mrb[5].mxu0 }
 0x103   : > { %v1042_v21 = vpop.f32.mrb[6].mxu0 }
 0x104   : > { %v472_v22 = vpack.c.bf16 %v1042_v21, %v1041_v19  ;;  %v457_v23 = vpop.f32.mrb[7].mxu0  ;;  %1046 = vmatpush3.bf16.msra.mxu1 %v470_v16 }
 0x105   : > { %v471_v24 = vpack.c.bf16 %v457_v23, %v454_v20 }
 0x107   : > { %1047 = vmatprep.subr.bf16.mxu1 %v471_v24 }
 0x108   : > { %1048 = vmatpush3.bf16.msra.mxu1 %v471_v24 }
 0x109   : > { %1049 = vmatprep.subr.bf16.mxu1 %v472_v22 }
 0x10c   : > { %1050 = vmatpush3.bf16.msra.mxu1 %v472_v22 }
 0x10d   : > { %1059 = vmatprep.subr.bf16.mxu1 %v1214_v0 }
 0x10f   : > { %1052 = vmatmul.mubr.msk.bf16.vlgmr.msra.gmra.mrb[0].mxu1 %vm493_vm0, %v1282_v25 }
 0x110   : > { %1055 = vmatprep.mubr.msk.bf16.mxu1 %vm493_vm0, %v1285_v26  ;;  %1060 = vmatpush3.bf16.msra.mxu1 %v1214_v0 }
 0x111   : > { %1061 = vmatprep.subr.bf16.mxu1 %v1219_v1 }
 0x114   : > { %1062 = vmatpush3.bf16.msra.mxu1 %v1219_v1 }
 0x115   : > { %1063 = vmatprep.subr.bf16.mxu1 %v1229_v2 }
 0x117   : > { %1056 = vmatmul.mubr.msk.bf16.gmra.mrb[4].mxu1 %vm493_vm0, %v1295_v27 }
 0x118   : > { %1064 = vmatpush3.bf16.msra.mxu1 %v1229_v2 }
 0x119   : > { %1065 = vmatprep.subr.bf16.mxu1 %v1239_v3 }
 0x11c   : > { %1066 = vmatpush3.bf16.msra.mxu1 %v1239_v3 }
 0x11d   : > { %1067 = vmatprep.subr.bf16.mxu1 %v1247_v5 }
 0x120   : > { %1068 = vmatpush3.bf16.msra.mxu1 %v1247_v5 }
 0x121   : > { %1069 = vmatprep.subr.bf16.mxu1 %v1254_v6 }
 0x124   : > { %1070 = vmatpush3.bf16.msra.mxu1 %v1254_v6 }
 0x125   : > { %1071 = vmatprep.subr.bf16.mxu1 %v1261_v7 }
 0x128   : > { %1072 = vmatpush3.bf16.msra.mxu1 %v1261_v7 }
 0x129   : > { %1073 = vmatprep.subr.bf16.mxu1 %v1268_v8 }
 0x12c   : > { %1074 = vmatpush3.bf16.msra.mxu1 %v1268_v8 }
 0x12d   : > { %1111 = vmatprep.subr.bf16.mxu1 %v1166_v13 }
 0x1e2   : > { %v1053_v29 = vpop.f32.mrb[0].mxu1 }
 0x1e3   : > { %v549_v30 = vadd.f32 %v1053_v29, %v1315_v28  ;;  %v540_v31 = vpop.f32.mrb[1].mxu1 }
 0x1e4   : > { %v541_v32 = vadd.f32 %v1315_v28, %v540_v31  ;;  %v1054_v33 = vpop.f32.mrb[2].mxu1 }
 0x1e5   : > { %v552_v34 = vadd.f32 %v1054_v33, %v1315_v28  ;;  %v543_v35 = vpop.f32.mrb[3].mxu1  ;;  %v573_v37 = vmax.f32 %v549_v30, 0.0 }
 0x1e6   : > { %v544_v36 = vadd.f32 %v1315_v28, %v543_v35  ;;  %v571_v39 = vmax.f32 %v541_v32, 0.0  ;;  %v1157_v35 = vld [vmem:[%s1338_s29] sm:$0xff]  }
 0x1e7   : > { %v574_v38 = vmax.f32 %v552_v34, 0.0 }
 0x1e8   : > { %v572_v40 = vmax.f32 %v544_v36, 0.0 }
 0x1e9   : > { %v580_v41 = vpack.c.bf16 %v574_v38, %v573_v37 }
 0x1ea   : > { %v579_v42 = vpack.c.bf16 %v572_v40, %v571_v39  ;;  %v1057_v43 = vpop.f32.mrb[4].mxu1 }
 0x1eb   : > { %v565_v44 = vadd.f32 %v1057_v43, %v1315_v28  ;;  %v556_v45 = vpop.f32.mrb[5].mxu1 }
 0x1ec   : > { %v557_v46 = vadd.f32 %v1315_v28, %v556_v45  ;;  %v1058_v47 = vpop.f32.mrb[6].mxu1  ;;  %1075 = vmatprep.mubr.bf16.mxu1 %v579_v42  ;;  %v958_v45 = vld [vmem:[%s1372_s5] ss:$0 sm:$0xff] }
 0x1ed   : > { %v568_v48 = vadd.f32 %v1058_v47, %v1315_v28  ;;  %v559_v49 = vpop.f32.mrb[7].mxu1  ;;  %1076 = vmatmul.mubr.bf16.vlgmr.msra.gmra.mrb[8].mxu1 %v580_v41  ;;  %v577_v51 = vmax.f32 %v565_v44, 0.0 }
 0x1ee   : > { %v560_v50 = vadd.f32 %v1315_v28, %v559_v49  ;;  %v575_v53 = vmax.f32 %v557_v46, 0.0  ;;  %1112 = vmatpush3.bf16.msra.mxu1 %v1214_v0 }
 0x1ef   : > { %v578_v52 = vmax.f32 %v568_v48, 0.0  ;;  %1113 = vmatprep.subr.bf16.mxu1 %v1166_v13 }
 0x1f0   : > { %v576_v54 = vmax.f32 %v560_v50, 0.0 }
 0x1f1   : > { %v582_v55 = vpack.c.bf16 %v578_v52, %v577_v51 }
 0x1f2   : > { %v581_v56 = vpack.c.bf16 %v576_v54, %v575_v53  ;;  %1114 = vmatpush3.bf16.msra.mxu1 %v1219_v1 }
 0x1f3   : > { %1115 = vmatprep.subr.bf16.mxu1 %v1166_v13 }
 0x1f4   : > { %1079 = vmatprep.mubr.bf16.mxu1 %v581_v56 }
 0x1f5   : > { %1080 = vmatmul.mubr.bf16.gmra.mrb[12].mxu1 %v582_v55 }
 0x1f6   : > { %1116 = vmatpush3.bf16.msra.mxu1 %v1229_v2  ;;  %1127 = vmatprep.mubr.msk.bf16.mxu1 %vm1167_vm1, %v1166_v13 }
 0x1f7   : > { %1117 = vmatprep.subr.bf16.mxu1 %v1166_v13 }
 0x1fa   : > { %1118 = vmatpush3.bf16.msra.mxu1 %v1239_v3 }
 0x1fb   : > { %1119 = vmatprep.subr.bf16.mxu1 %v1166_v13 }
 0x1fe   : > { %1120 = vmatpush3.bf16.msra.mxu1 %v1247_v5 }
 0x1ff   : > { %1121 = vmatprep.subr.bf16.mxu1 %v1166_v13 }
 0x202   : > { %1122 = vmatpush3.bf16.msra.mxu1 %v1254_v6 }
 0x203   : > { %1123 = vmatprep.subr.bf16.mxu1 %v1166_v13 }
 0x206   : > { %1124 = vmatpush3.bf16.msra.mxu1 %v1261_v7 }
 0x207   : > { %1125 = vmatprep.subr.bf16.mxu1 %v1166_v13 }
 0x20a   : > { %1126 = vmatpush3.bf16.msra.mxu1 %v1268_v8 }
 0x2c0   : > { %v1077_v57 = vpop.f32.mrb[8].mxu1 }
 0x2c1   : > { %v617_v58 = vpop.f32.mrb[9].mxu1 }
 0x2c2   : > { %v1078_v59 = vpop.f32.mrb[10].mxu1 }
 0x2c3   : > { %v649_v60 = vpack.c.bf16 %v1078_v59, %v1077_v57  ;;  %v620_v61 = vpop.f32.mrb[11].mxu1 }
 0x2c4   : > { %v648_v62 = vpack.c.bf16 %v620_v61, %v617_v58 }
 0x2c6   : > { %1083 = vmatprep.subr.bf16.mxu0 %v648_v62 }
 0x2c7   : > { %1084 = vmatpush3.bf16.msra.mxu0 %v648_v62 }
 0x2c8   : > { %v1081_v63 = vpop.f32.mrb[12].mxu1  ;;  %1085 = vmatprep.subr.bf16.mxu0 %v649_v60 }
 0x2c9   : > { %v633_v4 = vpop.f32.mrb[13].mxu1 }
 0x2ca   : > { %v1082_v9 = vpop.f32.mrb[14].mxu1 }
 0x2cb   : > { %v651_v10 = vpack.c.bf16 %v1082_v9, %v1081_v63  ;;  %v636_v11 = vpop.f32.mrb[15].mxu1  ;;  %1086 = vmatpush3.bf16.msra.mxu0 %v649_v60 }
 0x2cc   : > { %v650_v12 = vpack.c.bf16 %v636_v11, %v633_v4 }
 0x2ce   : > { %1087 = vmatprep.subr.bf16.mxu0 %v650_v12 }
 0x2cf   : > { %1088 = vmatpush3.bf16.msra.mxu0 %v650_v12 }
 0x2d0   : > { %1089 = vmatprep.subr.bf16.mxu0 %v651_v10 }
 0x2d3   : > { %1090 = vmatpush3.bf16.msra.mxu0 %v651_v10 }
 0x2d4   : > { %1099 = vmatprep.subr.bf16.mxu0 %v1166_v13 }
 0x2d6   : > { %1092 = vmatmul.mubr.msk.bf16.vlgmr.msra.gmra.mrb[8].mxu0 %vm493_vm0, %v1282_v25 }
 0x2d7   : > { %1095 = vmatprep.mubr.msk.bf16.mxu0 %vm493_vm0, %v1285_v26 }
 0x2de   : > { %1096 = vmatmul.mubr.msk.bf16.gmra.mrb[12].mxu0 %vm493_vm0, %v1295_v27 }
 0x2df   : > { %1107 = vmatprep.mubr.msk.bf16.mxu0 %vm1167_vm1, %v1166_v13 }
 0x3a9   : > { %v1093_v0 = vpop.f32.mrb[8].mxu0 }
 0x3aa   : > { %v695_v1 = vadd.f32 %v1093_v0, %v1315_v28  ;;  %v686_v2 = vpop.f32.mrb[9].mxu0 }
 0x3ab   : > { %v687_v3 = vadd.f32 %v1315_v28, %v686_v2  ;;  %v1094_v14 = vpop.f32.mrb[10].mxu0 }
 0x3ac   : > { %v698_v15 = vadd.f32 %v1094_v14, %v1315_v28  ;;  %v689_v16 = vpop.f32.mrb[11].mxu0  ;;  %v719_v17 = vmax.f32 %v695_v1, 0.0 }
 0x3ad   : > { %v690_v5 = vadd.f32 %v1315_v28, %v689_v16  ;;  %v717_v18 = vmax.f32 %v687_v3, 0.0 }
 0x3ae   : > { %v720_v6 = vmax.f32 %v698_v15, 0.0 }
 0x3af   : > { %v718_v19 = vmax.f32 %v690_v5, 0.0 }
 0x3b0   : > { %v726_v7 = vpack.c.bf16 %v720_v6, %v719_v17 }
 0x3b1   : > { %v725_v20 = vpack.c.bf16 %v718_v19, %v717_v18  ;;  %v1097_v21 = vpop.f32.mrb[12].mxu0 }
 0x3b2   : > { %v711_v8 = vadd.f32 %v1097_v21, %v1315_v28  ;;  %v702_v22 = vpop.f32.mrb[13].mxu0 }
 0x3b3   : > { %v703_v23 = vadd.f32 %v1315_v28, %v702_v22  ;;  %v1098_v24 = vpop.f32.mrb[14].mxu0  ;;  %1100 = vmatpush3.bf16.msra.mxu0 %v725_v20 }
 0x3b4   : > { %v714_v25 = vadd.f32 %v1098_v24, %v1315_v28  ;;  %v705_v26 = vpop.f32.mrb[15].mxu0  ;;  %1101 = vmatprep.subr.bf16.mxu0 %v1166_v13  ;;  %v723_v29 = vmax.f32 %v711_v8, 0.0 }
 0x3b5   : > { %v706_v27 = vadd.f32 %v1315_v28, %v705_v26  ;;  %v721_v31 = vmax.f32 %v703_v23, 0.0 }
 0x3b6   : > { %v724_v30 = vmax.f32 %v714_v25, 0.0 }
 0x3b7   : > { %v722_v32 = vmax.f32 %v706_v27, 0.0  ;;  %1102 = vmatpush3.bf16.msra.mxu0 %v726_v7 }
 0x3b8   : > { %v728_v33 = vpack.c.bf16 %v724_v30, %v723_v29  ;;  %1103 = vmatprep.subr.bf16.mxu0 %v1166_v13 }
 0x3b9   : > { %v727_v34 = vpack.c.bf16 %v722_v32, %v721_v31 }
 0x3bb   : > { %1104 = vmatpush3.bf16.msra.mxu0 %v727_v34 }
 0x3bc   : > { %1105 = vmatprep.subr.bf16.mxu0 %v1166_v13 }
 0x3bf   : > { %1106 = vmatpush3.bf16.msra.mxu0 %v728_v33 }
 0x3c2   : > { %1108 = vmatmul.mubr.msk.bf16.vlgmr.msra.gmra.mrb[16].mxu0 %vm493_vm0, %v1157_v35 }
 0x495   : > { %v773_v36 = vpop.f32.mrb[16].mxu0 }
 0x496   : > { %v1109_v37 = vpop.f32.mrb[17].mxu0 }
 0x497   : > { %v776_v38 = vpop.f32.mrb[18].mxu0 }
 0x498   : > { %v780_v39 = vpack.c.bf16 %v776_v38, %v773_v36  ;;  %v1110_v40 = vpop.f32.mrb[19].mxu0 }
 0x49a   : > { %1128 = vmatmul.mubr.bf16.vlgmr.msra.gmra.mrb[16].mxu1 %v780_v39 }
 0x56d   : > { %v815_v41 = vpop.f32.mrb[16].mxu1 }
 0x56e   : > { %v816_v42 = vadd.f32 %v1315_v28, %v815_v41  ;;  %v1129_v43 = vpop.f32.mrb[17].mxu1 }
 0x56f   : > { %v818_v44 = vpop.f32.mrb[18].mxu1 }
 0x570   : > { %v822_v46 = vmax.f32 %v816_v42, 0.0  ;;  %v819_v47 = vadd.f32 %v1315_v28, %v818_v44  ;;  %v1130_v48 = vpop.f32.mrb[19].mxu1 }
 0x572   : > { %v823_v49 = vmax.f32 %v819_v47, 0.0  ;;  %v831_v50 = vmul.f32 %v958_v45, %v822_v46 }
 0x574   : > { %833 = vadd.xlane.f32.xlu0 %v831_v50  ;;  %v832_v51 = vmul.f32 %v958_v45, %v823_v49 }
 0x578   : > { %835 = vadd.xlane.f32.xlu0 %v832_v51 }
 0x601   : > { %v834_v52 = vpop.xlane.xlu0 %833 }
 0x602   : > { %837 = vst [vmem:[%s291_s11] sm:$0xff] %v834_v52 }
 0x605   : > { %v836_v53 = vpop.xlane.xlu0 %835 }
 0x606   : > { %838 = vst [vmem:[%s291_s11 + $0x8] sm:$0xff] %v836_v53 }
 0x607 PF: > { %s16_s21 = sadd.s32 1, %s1164_s21  }
 0x608   : > { %p13_p4 = scmp.ge.s32.totalorder %s16_s21, 4  }
 0x60a   :  { %15 = sbr.rel (!%p13_p4) target bundleno = 1 (0x1), region = 80 }

</bundles_post_ra>
